<compile_context>
chip_gen: v7x
topology: tpu7x:2x2x1
jax: 0.10.0
libtpu: 0.0.40
codegen_flags: <defaults>
</compile_context>

<pallas_src>
import math

import jax
import jax.numpy as jnp
import numpy as np
from jax import lax
from jax.experimental import pallas as pl
from jax.experimental.pallas import tpu as pltpu

_INV_SQRT2 = 1.0 / math.sqrt(2.0)

# Split the row axis across grid steps only when total work is large enough to
# amortize per-step / per-core overhead (~0.35 us per grid step, cross-TC
# dispatch on v7x).  >= ~8 MFLOP per core when split two ways.
_SPLIT_FLOPS_THRESHOLD = 16 * 1024 * 1024


# ----------------------------------------------------------------------------
# Kernel: y = GELU(x @ W1 + b1) @ W2 + b2   on lane-dense (rows, pack*dim) tiles
# ----------------------------------------------------------------------------
def ff_kernel(x_ref, w1_ref, b1_ref, w2_ref, b2_ref, o_ref):
    x = x_ref[...]                                                  # (rows, pack*dim)
    # TODO(synk): for production dims (pack=1, dim>=128, MXU-bound) cast the
    # matmul inputs to bf16 (keep f32 accumulation + f32 GELU/bias math) for
    # 3-4x MXU throughput on v6e/v7x; kept exact f32 here.
    h = jnp.dot(x, w1_ref[...], preferred_element_type=jnp.float32) + b1_ref[...]
    # exact (erf-based) GELU, matching torch.nn.GELU() default
    h = 0.5 * h * (1.0 + lax.erf(h * _INV_SQRT2))
    y = jnp.dot(h, w2_ref[...], preferred_element_type=jnp.float32) + b2_ref[...]
    o_ref[...] = y.astype(o_ref.dtype)


# ----------------------------------------------------------------------------
# One-time parameter packing (block-diagonal weights for the lane-dense layout)
# ----------------------------------------------------------------------------
def prepare_ff_params(w1, b1, w2, b2, pack):
    """Pack FF weights so `pack` consecutive tokens share one 128-lane row.

    NOTE: the kron packing inflates weight bytes by pack**2; do this ONCE and
    cache the result (do not re-pack per call inside a jit trace).
    """
    if pack == 1:
        w1p, b1p, w2p, b2p = w1, b1, w2, b2
    else:
        eye = jnp.eye(pack, dtype=w1.dtype)
        w1p = jnp.kron(eye, w1)          # (pack*dim, pack*hidden), block-diagonal
        w2p = jnp.kron(eye, w2)          # (pack*hidden, pack*dim), block-diagonal
        b1p = jnp.tile(b1, pack)
        b2p = jnp.tile(b2, pack)
    return dict(
        w1=w1p, b1=b1p.reshape(1, -1),
        w2=w2p, b2=b2p.reshape(1, -1),
    )


def _choose_block_rows(mp, dpack, hpack):
    """Return (block_rows, split).  split=False -> single grid step."""
    total_flops = 4 * mp * dpack * hpack                 # two matmuls
    if total_flops >= _SPLIT_FLOPS_THRESHOLD:
        # Largest sublane-aligned row block (<=512) dividing mp with >=2 steps.
        for cand in (512, 256, 128, 64, 32, 16, 8):
            if mp % cand == 0 and mp // cand >= 2:
                return cand, True
    # Single block == the full array.  This is legal even when mp is not a
    # multiple of 8 *only because* the block equals the full array extent.
    return mp, False


# ----------------------------------------------------------------------------
# Wrapper
# ----------------------------------------------------------------------------
def feed_forward(x, packed_params, *, pack):
    """x: (..., dim) float32.  packed_params from prepare_ff_params."""
    *lead, dim = x.shape
    m = int(np.prod(lead))
    assert m % pack == 0, "leading dims must be divisible by the pack factor"
    mp = m // pack
    dpack = dim * pack
    hpack = packed_params["w1"].shape[1]

    # contiguous reshape: each dense row holds `pack` consecutive tokens
    x2 = x.reshape(mp, dpack)

    block_rows, split = _choose_block_rows(mp, dpack, hpack)
    if split:
        assert block_rows % 8 == 0 and mp % block_rows == 0
    else:
        # invariant: single block must cover the full row extent
        assert block_rows == mp
    grid = (mp // block_rows,)

    cost = pl.CostEstimate(
        flops=4 * mp * dpack * hpack,                     # two (padded) matmuls
        transcendentals=mp * hpack,                       # erf in GELU
        bytes_accessed=4 * (2 * mp * dpack + 2 * dpack * hpack + dpack + hpack),
    )

    # Grid-invariant operands (index_map == (0,0) for every step): in the
    # multi-step path, single-buffer them so they occupy one VMEM buffer each.
    const_kw = dict(pipeline_mode=pl.Buffered(1)) if split else {}

    in_specs = [pl.BlockSpec((block_rows, dpack), lambda i: (i, 0))]      # x rows
    for shape in ((dpack, hpack), (1, hpack), (hpack, dpack), (1, dpack)):
        in_specs.append(pl.BlockSpec(shape, lambda i: (0, 0), **const_kw))

    compiler_kwargs = dict(
        dimension_semantics=(("parallel",) if split else ("arbitrary",)),
    )
    # VMEM budgeting: x/out double-buffered; weights single/double per path.
    wbuf = 1 if split else 2
    est_vmem_bytes = 4 * (
        2 * 2 * block_rows * dpack                 # x + out, 2 buffers each
        + wbuf * 2 * dpack * hpack                 # W1 + W2
        + wbuf * (dpack + hpack)                   # b1 + b2
    )
    if est_vmem_bytes > 32 * 1024 * 1024:
        # TODO(synk): on v7x (64 MiB physical VMEM) production dims may need a
        # hidden-dim grid axis + accumulator instead of resident W1/W2.
        compiler_kwargs["vmem_limit_bytes"] = int(est_vmem_bytes * 1.25)

    out = pl.pallas_call(
        ff_kernel,
        out_shape=jax.ShapeDtypeStruct((mp, dpack), x.dtype),
        grid=grid,
        in_specs=in_specs,
        out_specs=pl.BlockSpec((block_rows, dpack), lambda i: (i, 0)),
        compiler_params=pltpu.CompilerParams(**compiler_kwargs),
        cost_estimate=cost,
    )(x2, packed_params["w1"], packed_params["b1"],
      packed_params["w2"], packed_params["b2"])

    return out.reshape(*lead, dim)


# ----------------------------------------------------------------------------
# Pure-JAX reference (for correctness check)
# ----------------------------------------------------------------------------
def reference(x, w1, b1, w2, b2):
    h = x @ w1 + b1
    h = 0.5 * h * (1.0 + lax.erf(h * _INV_SQRT2))
    return h @ w2 + b2


if __name__ == "__main__":
    # FeedForward(dim=32, hidden_dim=64) applied to a (B, N, dim) token stream
    # (as used inside the CoAtNet Transformer block, N = 8*8 spatial positions).
    B, N, dim = 2, 64, 32
    hidden = dim * 2

    key = jax.random.PRNGKey(0)
    k1, k2, k3, k4, k5 = jax.random.split(key, 5)
    w1 = 0.05 * jax.random.normal(k1, (dim, hidden), jnp.float32)
    b1 = 0.01 * jax.random.normal(k2, (hidden,), jnp.float32)
    w2 = 0.05 * jax.random.normal(k3, (hidden, dim), jnp.float32)
    b2 = 0.01 * jax.random.normal(k4, (dim,), jnp.float32)
    x = jax.random.normal(k5, (B, N, dim), jnp.float32)

    # lane-dense pack factor: 4 tokens of 32 channels per 128-lane row
    pack = 128 // dim if (dim <= 128 and 128 % dim == 0 and (B * N) % (128 // dim) == 0) else 1
    packed_params = prepare_ff_params(w1, b1, w2, b2, pack)

    # TODO(synk): CoordLinear branch (is_Coord=True) not implemented; default is False.
    # nn.Dropout(p=0.0) is an identity at inference and is omitted.

    out = feed_forward(x, packed_params, pack=pack)
    out = jax.block_until_ready(out)

    ref = jax.block_until_ready(reference(x, w1, b1, w2, b2))
    np.testing.assert_allclose(np.asarray(out), np.asarray(ref), rtol=2e-3, atol=2e-3)

    print("KERNEL_OK")
</pallas_src>

<mosaic_0001>
module attributes {stable_mosaic.version = 11 : i64} {
  func.func @ff_kernel(%arg0: i32, %arg1: memref<32x128xf32, #tpu.memory_space<vmem>>, %arg2: memref<128x256xf32, #tpu.memory_space<vmem>>, %arg3: memref<1x256xf32, #tpu.memory_space<vmem>>, %arg4: memref<256x128xf32, #tpu.memory_space<vmem>>, %arg5: memref<1x128xf32, #tpu.memory_space<vmem>>, %arg6: memref<32x128xf32, #tpu.memory_space<vmem>>) attributes {dimension_semantics = [#tpu.dimension_semantics<arbitrary>], iteration_bounds = array<i64: 1>, scalar_prefetch = 0 : i64, scratch_operands = 0 : i64, tpu.core_type = #tpu.core_type<tc>, window_params = [{transform_indices = @transform_0, window_bounds = array<i64: 32, 128>}, {pipeline_mode = #tpu.pipeline_mode<synchronous>, transform_indices = @transform_1, window_bounds = array<i64: 128, 256>}, {pipeline_mode = #tpu.pipeline_mode<synchronous>, transform_indices = @transform_2, window_bounds = array<i64: 1, 256>}, {pipeline_mode = #tpu.pipeline_mode<synchronous>, transform_indices = @transform_3, window_bounds = array<i64: 256, 128>}, {pipeline_mode = #tpu.pipeline_mode<synchronous>, transform_indices = @transform_4, window_bounds = array<i64: 1, 128>}, {transform_indices = @transform_5, window_bounds = array<i64: 32, 128>}]} {
    %c0 = arith.constant 0 : index
    %c0_0 = arith.constant 0 : index
    %0 = vector.load %arg1[%c0, %c0_0] : memref<32x128xf32, #tpu.memory_space<vmem>>, vector<32x128xf32>
    %c0_1 = arith.constant 0 : index
    %c0_2 = arith.constant 0 : index
    %1 = vector.load %arg2[%c0_1, %c0_2] : memref<128x256xf32, #tpu.memory_space<vmem>>, vector<128x256xf32>
    %cst = arith.constant dense<0.000000e+00> : vector<32x256xf32>
    %2 = tpu.matmul %0, %1, %cst {dimension_numbers = #tpu.dot_dimension_numbers<[1], [0], [0], [1], [0, 0, 1, 1], [], []>} : vector<32x128xf32>, vector<128x256xf32>, vector<32x256xf32> -> vector<32x256xf32>
    %c0_3 = arith.constant 0 : index
    %c0_4 = arith.constant 0 : index
    %3 = vector.load %arg3[%c0_3, %c0_4] : memref<1x256xf32, #tpu.memory_space<vmem>>, vector<1x256xf32>
    %4 = vector.broadcast %3 : vector<1x256xf32> to vector<32x256xf32>
    %5 = arith.addf %2, %4 : vector<32x256xf32>
    %cst_5 = arith.constant 5.000000e-01 : f32
    %6 = vector.broadcast %cst_5 : f32 to vector<32x256xf32>
    %7 = arith.mulf %6, %5 : vector<32x256xf32>
    %cst_6 = arith.constant 0.707106769 : f32
    %8 = vector.broadcast %cst_6 : f32 to vector<32x256xf32>
    %9 = arith.mulf %5, %8 : vector<32x256xf32>
    %10 = math.erf %9 : vector<32x256xf32>
    %cst_7 = arith.constant 1.000000e+00 : f32
    %11 = vector.broadcast %cst_7 : f32 to vector<32x256xf32>
    %12 = arith.addf %11, %10 : vector<32x256xf32>
    %13 = arith.mulf %7, %12 : vector<32x256xf32>
    %c0_8 = arith.constant 0 : index
    %c0_9 = arith.constant 0 : index
    %14 = vector.load %arg4[%c0_8, %c0_9] : memref<256x128xf32, #tpu.memory_space<vmem>>, vector<256x128xf32>
    %cst_10 = arith.constant dense<0.000000e+00> : vector<32x128xf32>
    %15 = tpu.matmul %13, %14, %cst_10 {dimension_numbers = #tpu.dot_dimension_numbers<[1], [0], [0], [1], [0, 0, 1, 1], [], []>} : vector<32x256xf32>, vector<256x128xf32>, vector<32x128xf32> -> vector<32x128xf32>
    %c0_11 = arith.constant 0 : index
    %c0_12 = arith.constant 0 : index
    %16 = vector.load %arg5[%c0_11, %c0_12] : memref<1x128xf32, #tpu.memory_space<vmem>>, vector<1x128xf32>
    %17 = vector.broadcast %16 : vector<1x128xf32> to vector<32x128xf32>
    %18 = arith.addf %15, %17 : vector<32x128xf32>
    %c0_13 = arith.constant 0 : index
    %c0_14 = arith.constant 0 : index
    %19 = vector.load %arg6[%c0_13, %c0_14] : memref<32x128xf32, #tpu.memory_space<vmem>>, vector<32x128xf32>
    tpu.vector_store %arg6[%c0_13, %c0_14], %18 {strides = array<i32>} : memref<32x128xf32, #tpu.memory_space<vmem>>, vector<32x128xf32>,
    return
  }
  func.func @transform_0(%arg0: i32) -> (i32, i32) {
    %c0_i32 = arith.constant 0 : i32
    %c0_i32_0 = arith.constant 0 : i32
    return %arg0, %c0_i32 : i32, i32
  }
  func.func @transform_1(%arg0: i32) -> (i32, i32) {
    %c0_i32 = arith.constant 0 : i32
    %c0_i32_0 = arith.constant 0 : i32
    %c0_i32_1 = arith.constant 0 : i32
    return %c0_i32, %c0_i32_0 : i32, i32
  }
  func.func @transform_2(%arg0: i32) -> (i32, i32) {
    %c0_i32 = arith.constant 0 : i32
    %c0_i32_0 = arith.constant 0 : i32
    %c0_i32_1 = arith.constant 0 : i32
    return %c0_i32, %c0_i32_0 : i32, i32
  }
  func.func @transform_3(%arg0: i32) -> (i32, i32) {
    %c0_i32 = arith.constant 0 : i32
    %c0_i32_0 = arith.constant 0 : i32
    %c0_i32_1 = arith.constant 0 : i32
    return %c0_i32, %c0_i32_0 : i32, i32
  }
  func.func @transform_4(%arg0: i32) -> (i32, i32) {
    %c0_i32 = arith.constant 0 : i32
    %c0_i32_0 = arith.constant 0 : i32
    %c0_i32_1 = arith.constant 0 : i32
    return %c0_i32, %c0_i32_0 : i32, i32
  }
  func.func @transform_5(%arg0: i32) -> (i32, i32) {
    %c0_i32 = arith.constant 0 : i32
    %c0_i32_0 = arith.constant 0 : i32
    return %arg0, %c0_i32 : i32, i32
  }
}

</mosaic_0001>

<bundles_post_ra>
// kernel: tpu_custom_call.1
= control target key start
LH: loop header
LB: loop body
LE: loop exit
PB: predicated region body
PF: predicated region fallthrough
CT: control target
= control target key end

     0   :  { %10 = vsyncpa [#allocation3], 0  ;;  %s719_s0 = inlined_call_operand.hbm [shape: f32[32,128], index: 0, kind: input, shape index: {}]   ;;  %s720_s1 = inlined_call_operand.hbm [shape: f32[128,256], index: 1, kind: input, shape index: {}]   ;;  %s721_s2 = inlined_call_operand.vmem [shape: f32[1,256], index: 2, kind: input, shape index: {}]   ;;  %s722_s3 = inlined_call_operand.hbm [shape: f32[256,128], index: 3, kind: input, shape index: {}]   ;;  %s723_s4 = inlined_call_operand.vmem [shape: f32[1,128], index: 4, kind: input, shape index: {}]   ;;  %s724_s5 = inlined_call_operand.hbm [shape: f32[32,128], index: 5, kind: output, shape index: {}]  }
   0x1   :  { %11 = vsyncpa [#allocation6], 0 }
   0x2   :  { %12 = vsyncpa [#allocation4], 0  ;;  %s613_s18 = smov [#allocation5]   ;;  %s519_s22 = scalar_lea.hbm %s720_s1, 4096 }
   0x3   :  { %s30_s19 = sshll.u32 %s613_s18, 4  ;;  %p520_p0 = scmp.ne.s32.totalorder %s720_s1, %s519_s22  ;;  %s31_s19 = int_to_ptr.vmem [resolvable:$true] %s30_s19 }
   0x4   :  { %p523_p1 = scmp.lt.u32.totalorder %s519_s22, %s720_s1 }
   0x6   :  { %p525_p2 = pnand %p523_p1, %p520_p0 }
   0x8   :  { %528 = shalt.err (!%p525_p2)
}
   0x9   :  { %s529_s27 = scalar_lea.vmem %s31_s19, 4096  ;;  %p534_p4 = scmp.lt.s32.totalorder %s31_s19, %s31_s19 }
   0xa   :  { %p530_p3 = scmp.ne.s32.totalorder %s31_s19, %s529_s27  ;;  %p535_p5 = scmp.lt.s32.totalorder %s529_s27, %s529_s27 }
   0xc   :  { %p536_p6 = por %p535_p5, %p534_p4 }
   0xe   :  { %p537_p7 = pnand %p536_p6, %p530_p3 }
  0x10   :  { %540 = shalt.err (!%p537_p7)
}
  0x11   :  { %s614_s28 = smov 256   ;;  %s615_s29 = smov 16  }
  0x12   :  { %36 = dma.hbm_to_vmem [thread:$0]  %s720_s1, 4096, %s31_s19, [#allocation6], %s614_s28, %s614_s28, %s615_s29  }
  0x13   :  { %s616_s7 = smov [#allocation2]   ;;  %s541_s11 = scalar_lea.hbm %s719_s0, 512 }
  0x14   :  { %s18_s8 = sshll.u32 %s616_s7, 4  ;;  %p542_p8 = scmp.ne.s32.totalorder %s719_s0, %s541_s11  ;;  %s19_s8 = int_to_ptr.vmem [resolvable:$true] %s18_s8 }
  0x15   :  { %p545_p9 = scmp.lt.u32.totalorder %s541_s11, %s719_s0 }
  0x17   :  { %p547_p10 = pnand %p545_p9, %p542_p8 }
  0x19   :  { %550 = shalt.err (!%p547_p10)
}
  0x1a   :  { %s551_s16 = scalar_lea.vmem %s19_s8, 512  ;;  %p556_p12 = scmp.lt.s32.totalorder %s19_s8, %s19_s8 }
  0x1b   :  { %p552_p11 = scmp.ne.s32.totalorder %s19_s8, %s551_s16  ;;  %p557_p13 = scmp.lt.s32.totalorder %s551_s16, %s551_s16 }
  0x1d   :  { %p558_p0 = por %p557_p13, %p556_p12 }
  0x1f   :  { %p559_p1 = pnand %p558_p0, %p552_p11 }
  0x21   :  { %562 = shalt.err (!%p559_p1)
}
  0x22   :  { %s617_s1 = smov 128   ;;  %s618_s17 = smov 8  }
  0x23   :  { %24 = dma.hbm_to_vmem [thread:$0]  %s719_s0, 512, %s19_s8, [#allocation3], %s617_s1, %s617_s1, %s618_s17  }
  0x24   :  { %s619_s20 = smov [#allocation7]   ;;  %s563_s24 = scalar_lea.hbm %s722_s3, 4096 }
  0x25   :  { %s44_s21 = sshll.u32 %s619_s20, 4  ;;  %p564_p2 = scmp.ne.s32.totalorder %s722_s3, %s563_s24  ;;  %s45_s21 = int_to_ptr.vmem [resolvable:$true] %s44_s21 }
  0x26   :  { %p567_p3 = scmp.lt.u32.totalorder %s563_s24, %s722_s3 }
  0x28   :  { %p569_p4 = pnand %p567_p3, %p564_p2 }
  0x2a   :  { %572 = shalt.err (!%p569_p4)
}
  0x2b   :  { %s573_s29 = scalar_lea.vmem %s45_s21, 4096  ;;  %p578_p6 = scmp.lt.s32.totalorder %s45_s21, %s45_s21 }
  0x2c   :  { %p574_p5 = scmp.ne.s32.totalorder %s45_s21, %s573_s29  ;;  %p579_p7 = scmp.lt.s32.totalorder %s573_s29, %s573_s29 }
  0x2e   :  { %p580_p8 = por %p579_p7, %p578_p6 }
  0x30   :  { %p581_p9 = pnand %p580_p8, %p574_p5 }
  0x32   :  { %584 = shalt.err (!%p581_p9)
}
  0x33   :  { %50 = dma.hbm_to_vmem [thread:$0]  %s722_s3, 4096, %s45_s21, [#allocation6], %s617_s1, %s617_s1, %s618_s17  }
  0x34   :  { %607 = dma.done.wait [#allocation3], 512  }
  0x35   :  { %608 = vsyncadd [#allocation3], 4294966784 }
  0x36   :  { %609 = dma.done.wait [#allocation6], 8192  }
  0x37   :  { %610 = vsyncadd [#allocation6], 4294959104  ;;  %v620_v0 = vmov 0.0   ;;  %v67_v1 = vld [vmem:[#allocation5 + $0x8] sm:$0xff]  ;;  %v69_v2 = vld [vmem:[#allocation5 + $0x18] sm:$0xff]  ;;  %s621_s8 = smov [#allocation8]  }
  0x38   :  { %174 = vmatprep.mubr.f32.mxu0 %v620_v0  ;;  %v66_v3 = vld [vmem:[#allocation5] sm:$0xff]  ;;  %v430_v4 = vpack.c.bf16 %v69_v2, %v67_v1  ;;  %v68_v5 = vld [vmem:[#allocation5 + $0x10] sm:$0xff]  ;;  %v71_v6 = vld [vmem:[#allocation5 + $0x28] sm:$0xff]  ;;  %s372_s9 = sshll.u32 %s621_s8, 4  ;;  %s373_s9 = int_to_ptr.vmem [resolvable:$true] %s372_s9 }
  0x39   :  { %v73_v7 = vld [vmem:[#allocation5 + $0x38] sm:$0xff]  ;;  %v432_v8 = vpack.c.bf16 %v68_v5, %v66_v3  ;;  %v70_v10 = vld [vmem:[#allocation5 + $0x20] sm:$0xff]  ;;  %v72_v11 = vld [vmem:[#allocation5 + $0x30] sm:$0xff]  ;;  %p590_p11 = scmp.lt.s32.totalorder %s373_s9, %s373_s9 }
  0x3a   :  { %v434_v9 = vpack.c.bf16 %v73_v7, %v71_v6  ;;  %v75_v12 = vld [vmem:[#allocation5 + $0x48] sm:$0xff]  ;;  %431 = vmatprep.subr.bf16.mxu0 %v430_v4  ;;  %v77_v13 = vld [vmem:[#allocation5 + $0x58] sm:$0xff]  ;;  %v436_v14 = vpack.c.bf16 %v72_v11, %v70_v10  ;;  %v74_v16 = vld [vmem:[#allocation5 + $0x40] sm:$0xff] }
  0x3b   :  { %433 = vmatpush1.bf16.msra.mxu0 %v432_v8  ;;  %v438_v15 = vpack.c.bf16 %v77_v13, %v75_v12  ;;  %v76_v17 = vld [vmem:[#allocation5 + $0x50] sm:$0xff]  ;;  %v79_v18 = vld [vmem:[#allocation5 + $0x68] sm:$0xff]  ;;  %v81_v19 = vld [vmem:[#allocation5 + $0x78] sm:$0xff] }
  0x3c   :  { %435 = vmatprep.subr.bf16.mxu0 %v434_v9  ;;  %v440_v20 = vpack.c.bf16 %v76_v17, %v74_v16  ;;  %v442_v21 = vpack.c.bf16 %v81_v19, %v79_v18  ;;  %v78_v22 = vld [vmem:[#allocation5 + $0x60] sm:$0xff]  ;;  %v80_v23 = vld [vmem:[#allocation5 + $0x70] sm:$0xff]  ;;  %v83_v24 = vld [vmem:[#allocation5 + $0x88] sm:$0xff] }
  0x3d   :  { %v85_v25 = vld [vmem:[#allocation5 + $0x98] sm:$0xff]  ;;  %v82_v26 = vld [vmem:[#allocation5 + $0x80] sm:$0xff]  ;;  %v84_v27 = vld [vmem:[#allocation5 + $0x90] sm:$0xff]  ;;  %v444_v28 = vpack.c.bf16 %v80_v23, %v78_v22 }
  0x3e   :  { %v87_v29 = vld [vmem:[#allocation5 + $0xa8] sm:$0xff]  ;;  %v89_v30 = vld [vmem:[#allocation5 + $0xb8] sm:$0xff]  ;;  %v255_v31 = vld [vmem:[#allocation7 + $0x80] sm:$0xff]  ;;  %v446_v34 = vpack.c.bf16 %v85_v25, %v83_v24  ;;  %v448_v45 = vpack.c.bf16 %v84_v27, %v82_v26 }
  0x3f   :  { %437 = vmatpush1.bf16.msra.mxu0 %v436_v14  ;;  %v256_v32 = vld [vmem:[#allocation7 + $0x88] sm:$0xff]  ;;  %v239_v33 = vld [vmem:[#allocation7] sm:$0xff]  ;;  %v257_v37 = vld [vmem:[#allocation7 + $0x90] sm:$0xff]  ;;  %v450_v48 = vpack.c.bf16 %v89_v30, %v87_v29 }
  0x40   :  { %439 = vmatprep.subr.bf16.mxu0 %v438_v15  ;;  %v462_v35 = vpack.c.bf16 %v256_v32, %v255_v31  ;;  %v240_v36 = vld [vmem:[#allocation7 + $0x8] sm:$0xff]  ;;  %v258_v38 = vld [vmem:[#allocation7 + $0x98] sm:$0xff]  ;;  %v241_v41 = vld [vmem:[#allocation7 + $0x10] sm:$0xff] }
  0x41   :  { %v464_v39 = vpack.c.bf16 %v240_v36, %v239_v33  ;;  %v466_v40 = vpack.c.bf16 %v258_v38, %v257_v37  ;;  %v242_v42 = vld [vmem:[#allocation7 + $0x18] sm:$0xff]  ;;  %v259_v43 = vld [vmem:[#allocation7 + $0xa0] sm:$0xff]  ;;  %v260_v44 = vld [vmem:[#allocation7 + $0xa8] sm:$0xff]  ;;  %v100_v37 = vlaneseq }
  0x42   :  { %463 = vmatprep.subr.bf16.mxu1 %v462_v35  ;;  %v86_v46 = vld [vmem:[#allocation5 + $0xa0] sm:$0xff]  ;;  %v468_v47 = vpack.c.bf16 %v242_v42, %v241_v41  ;;  %v88_v49 = vld [vmem:[#allocation5 + $0xb0] sm:$0xff]  ;;  %v470_v50 = vpack.c.bf16 %v260_v44, %v259_v43  ;;  %v244_v52 = vld [vmem:[#allocation7 + $0x28] sm:$0xff] }
  0x43   :  { %441 = vmatpush1.bf16.msra.mxu0 %v440_v20  ;;  %465 = vmatpush3.bf16.msra.mxu1 %v464_v39  ;;  %v243_v51 = vld [vmem:[#allocation7 + $0x20] sm:$0xff]  ;;  %v91_v53 = vld [vmem:[#allocation5 + $0xc8] sm:$0xff]  ;;  %v93_v54 = vld [vmem:[#allocation5 + $0xd8] sm:$0xff]  ;;  %v452_v55 = vpack.c.bf16 %v88_v49, %v86_v46  ;;  %v101_v38 = vshrl.u32 %v100_v37, 7 }
  0x44   :  { %443 = vmatprep.subr.bf16.mxu0 %v442_v21  ;;  %467 = vmatprep.subr.bf16.mxu1 %v466_v40  ;;  %v472_v56 = vpack.c.bf16 %v244_v52, %v243_v51  ;;  %v454_v57 = vpack.c.bf16 %v93_v54, %v91_v53  ;;  %v90_v58 = vld [vmem:[#allocation5 + $0xc0] sm:$0xff]  ;;  %v92_v59 = vld [vmem:[#allocation5 + $0xd0] sm:$0xff]  ;;  %v95_v60 = vld [vmem:[#allocation5 + $0xe8] sm:$0xff] }
  0x45   :  { %v97_v61 = vld [vmem:[#allocation5 + $0xf8] sm:$0xff]  ;;  %v456_v62 = vpack.c.bf16 %v92_v59, %v90_v58  ;;  %v94_v1 = vld [vmem:[#allocation5 + $0xe0] sm:$0xff]  ;;  %v96_v2 = vld [vmem:[#allocation5 + $0xf0] sm:$0xff]  ;;  %v102_v39 = vsub.s32 0, %v101_v38  ;;  %v106_v41 = vsub.s32 1, %v101_v38 }
  0x46   :  { %v458_v63 = vpack.c.bf16 %v97_v61, %v95_v60  ;;  %v460_v3 = vpack.c.bf16 %v96_v2, %v94_v1  ;;  %v62_v4 = vld [vmem:[#allocation2] sm:$0xff]  ;;  %v63_v5 = vld [vmem:[#allocation2 + $0x8] sm:$0xff]  ;;  %v64_v6 = vld [vmem:[#allocation2 + $0x10] sm:$0xff] }
  0x47   :  { %445 = vmatpush1.bf16.msra.mxu0 %v444_v28  ;;  %469 = vmatpush3.bf16.msra.mxu1 %v468_v47  ;;  %v65_v7 = vld [vmem:[#allocation2 + $0x18] sm:$0xff]  ;;  %v261_v8 = vld [vmem:[#allocation7 + $0xb0] sm:$0xff]  ;;  %v263_v14 = vld [vmem:[#allocation7 + $0xc0] sm:$0xff] }
  0x48   :  { %447 = vmatprep.subr.bf16.mxu0 %v446_v34  ;;  %471 = vmatprep.subr.bf16.mxu1 %v470_v50  ;;  %v262_v9 = vld [vmem:[#allocation7 + $0xb8] sm:$0xff]  ;;  %v245_v11 = vld [vmem:[#allocation7 + $0x30] sm:$0xff]  ;;  %v264_v15 = vld [vmem:[#allocation7 + $0xc8] sm:$0xff] }
  0x49   :  { %v474_v10 = vpack.c.bf16 %v262_v9, %v261_v8  ;;  %v246_v12 = vld [vmem:[#allocation7 + $0x38] sm:$0xff]  ;;  %v478_v16 = vpack.c.bf16 %v264_v15, %v263_v14  ;;  %v247_v17 = vld [vmem:[#allocation7 + $0x40] sm:$0xff]  ;;  %v248_v18 = vld [vmem:[#allocation7 + $0x48] sm:$0xff] }
  0x4a   :  { %v476_v13 = vpack.c.bf16 %v246_v12, %v245_v11  ;;  %v480_v19 = vpack.c.bf16 %v248_v18, %v247_v17  ;;  %v265_v20 = vld [vmem:[#allocation7 + $0xd0] sm:$0xff]  ;;  %v250_v23 = vld [vmem:[#allocation7 + $0x58] sm:$0xff]  ;;  %v267_v25 = vld [vmem:[#allocation7 + $0xe0] sm:$0xff] }
  0x4b   :  { %449 = vmatpush1.bf16.msra.mxu0 %v448_v45  ;;  %473 = vmatpush3.bf16.msra.mxu1 %v472_v56  ;;  %v249_v22 = vld [vmem:[#allocation7 + $0x50] sm:$0xff]  ;;  %v268_v26 = vld [vmem:[#allocation7 + $0xe8] sm:$0xff]  ;;  %v251_v28 = vld [vmem:[#allocation7 + $0x60] sm:$0xff] }
  0x4c   :  { %451 = vmatprep.subr.bf16.mxu0 %v450_v48  ;;  %475 = vmatprep.subr.bf16.mxu1 %v474_v10  ;;  %v484_v24 = vpack.c.bf16 %v250_v23, %v249_v22  ;;  %v486_v27 = vpack.c.bf16 %v268_v26, %v267_v25  ;;  %v252_v29 = vld [vmem:[#allocation7 + $0x68] sm:$0xff]  ;;  %v269_v31 = vld [vmem:[#allocation7 + $0xf0] sm:$0xff]  ;;  %v270_v32 = vld [vmem:[#allocation7 + $0xf8] sm:$0xff] }
  0x4d   :  { %v488_v30 = vpack.c.bf16 %v252_v29, %v251_v28  ;;  %v490_v33 = vpack.c.bf16 %v270_v32, %v269_v31  ;;  %v253_v34 = vld [vmem:[#allocation7 + $0x70] sm:$0xff]  ;;  %v254_v35 = vld [vmem:[#allocation7 + $0x78] sm:$0xff]  ;;  %v98_v40 = vld [vmem:[%s721_s2] sm:$0x3] }
  0x4e   :  { %v492_v36 = vpack.c.bf16 %v254_v35, %v253_v34  ;;  %v103_v42 = vrot.slane %v98_v40, %v102_v39  ;;  %v107_v43 = vrot.slane %v98_v40, %v106_v41  ;;  %v385_v37 = vld [vmem:[%s723_s4] ss:$0 sm:$0xff]  ;;  %s585_s4 = scalar_lea.vmem %s373_s9, 512 }
  0x4f   :  { %453 = vmatpush1.bf16.msra.mxu0 %v452_v55  ;;  %477 = vmatpush3.bf16.msra.mxu1 %v476_v13  ;;  %p586_p10 = scmp.ne.s32.totalorder %s373_s9, %s585_s4  ;;  %p591_p12 = scmp.lt.s32.totalorder %s585_s4, %s585_s4 }
  0x50   :  { %455 = vmatprep.subr.bf16.mxu0 %v454_v57  ;;  %479 = vmatprep.subr.bf16.mxu1 %v478_v16 }
  0x51   :  { %p592_p13 = por %p591_p12, %p590_p11 }
  0x53   :  { %457 = vmatpush1.bf16.msra.mxu0 %v456_v62  ;;  %481 = vmatpush3.bf16.msra.mxu1 %v480_v19  ;;  %p593_p0 = pnand %p592_p13, %p586_p10 }
  0x54   :  { %459 = vmatprep.subr.bf16.mxu0 %v458_v63 }
  0x57   :  { %461 = vmatpush1.bf16.msra.mxu0 %v460_v3 }
  0x5a   :  { %175 = vmatmul.mubr.f32.vlgmr.msra.gmra.mrb[0].mxu0 %v62_v4 }
  0x5b   :  { %180 = vmatprep.mubr.f32.mxu0 %v620_v0 }
  0x5e   :  { %181 = vmatmul.mubr.f32.gmra.mrb[2].mxu0 %v63_v5 }
  0x5f   :  { %186 = vmatprep.mubr.f32.mxu0 %v620_v0 }
  0x62   :  { %187 = vmatmul.mubr.f32.gmra.mrb[4].mxu0 %v64_v6 }
  0x63   :  { %192 = vmatprep.mubr.f32.mxu0 %v620_v0  ;;  %v266_v0 = vld [vmem:[#allocation7 + $0xd8] sm:$0xff] }
  0x64   :  { %v482_v21 = vpack.c.bf16 %v266_v0, %v265_v20 }
  0x66   :  { %193 = vmatmul.mubr.f32.gmra.mrb[6].mxu0 %v65_v7  ;;  %483 = vmatprep.subr.bf16.mxu1 %v482_v21 }
  0x67   :  { %485 = vmatpush3.bf16.msra.mxu1 %v484_v24 }
  0x68   :  { %487 = vmatprep.subr.bf16.mxu1 %v486_v27 }
  0x6b   :  { %489 = vmatpush3.bf16.msra.mxu1 %v488_v30 }
  0x6c   :  { %491 = vmatprep.subr.bf16.mxu1 %v490_v33 }
  0x6f   :  { %493 = vmatpush3.bf16.msra.mxu1 %v492_v36 }
 0x12d   :  { %v176_v44 = vpop.f32.mrb[0].mxu0 }
 0x12e   :  { %v177_v45 = vadd.f32 %v176_v44, %v103_v42  ;;  %v178_v46 = vpop.f32.mrb[1].mxu0 }
 0x12f   :  { %v179_v47 = vadd.f32 %v178_v46, %v107_v43 }
 0x130   :  { %v207_v48 = vmul.f32 0.70710677, %v177_v45  ;;  %v199_v10 = vmul.f32 0.5, %v177_v45 }
 0x131   :  { %v208_v49 = vmul.f32 0.70710677, %v179_v47  ;;  %v182_v50 = vpop.f32.mrb[2].mxu0  ;;  %v200_v8 = vmul.f32 0.5, %v179_v47 }
 0x132   :  { %503 = verf.f32 %v207_v48  ;;  %v183_v51 = vadd.f32 %v182_v50, %v103_v42  ;;  %v184_v52 = vpop.f32.mrb[3].mxu0 }
 0x133   :  { %505 = verf.f32 %v208_v49  ;;  %v185_v53 = vadd.f32 %v184_v52, %v107_v43 }
 0x134   :  { %v209_v54 = vmul.f32 0.70710677, %v183_v51  ;;  %v201_v18 = vmul.f32 0.5, %v183_v51 }
 0x135   :  { %v210_v55 = vmul.f32 0.70710677, %v185_v53  ;;  %v188_v56 = vpop.f32.mrb[4].mxu0  ;;  %v202_v16 = vmul.f32 0.5, %v185_v53 }
 0x136   :  { %507 = verf.f32 %v209_v54  ;;  %v189_v57 = vadd.f32 %v188_v56, %v103_v42  ;;  %v190_v58 = vpop.f32.mrb[5].mxu0 }
 0x137   :  { %509 = verf.f32 %v210_v55  ;;  %v191_v59 = vadd.f32 %v190_v58, %v107_v43 }
 0x138   :  { %v211_v60 = vmul.f32 0.70710677, %v189_v57  ;;  %v203_v25 = vmul.f32 0.5, %v189_v57 }
 0x139   :  { %v212_v61 = vmul.f32 0.70710677, %v191_v59  ;;  %v194_v62 = vpop.f32.mrb[6].mxu0  ;;  %v204_v23 = vmul.f32 0.5, %v191_v59 }
 0x13a   :  { %511 = verf.f32 %v211_v60  ;;  %v195_v63 = vadd.f32 %v194_v62, %v103_v42  ;;  %v196_v1 = vpop.f32.mrb[7].mxu0 }
 0x13b   :  { %513 = verf.f32 %v212_v61  ;;  %v197_v2 = vadd.f32 %v196_v1, %v107_v43 }
 0x13c   :  { %v504_v3 = vpop.eup %503  ;;  %v213_v4 = vmul.f32 0.70710677, %v195_v63  ;;  %v205_v33 = vmul.f32 0.5, %v195_v63 }
 0x13d   :  { %v506_v5 = vpop.eup %505  ;;  %v223_v6 = vadd.f32 1.0, %v504_v3  ;;  %v214_v7 = vmul.f32 0.70710677, %v197_v2  ;;  %v206_v31 = vmul.f32 0.5, %v197_v2 }
 0x13e   :  { %515 = verf.f32 %v213_v4  ;;  %v224_v9 = vadd.f32 1.0, %v506_v5 }
 0x13f   :  { %517 = verf.f32 %v214_v7  ;;  %v231_v15 = vmul.f32 %v223_v6, %v199_v10 }
 0x140   :  { %v508_v11 = vpop.eup %507  ;;  %v232_v12 = vmul.f32 %v224_v9, %v200_v8 }
 0x141   :  { %v510_v13 = vpop.eup %509  ;;  %v225_v14 = vadd.f32 1.0, %v508_v11 }
 0x142   :  { %v226_v17 = vadd.f32 1.0, %v510_v13  ;;  %342 = vmatprep.mubr.f32.mxu1 %v232_v12 }
 0x143   :  { %343 = vmatmul.mubr.f32.vlgmr.msra.gmra.mrb[0].mxu1 %v231_v15  ;;  %v233_v22 = vmul.f32 %v225_v14, %v201_v18 }
 0x144   :  { %v512_v19 = vpop.eup %511  ;;  %v234_v20 = vmul.f32 %v226_v17, %v202_v16 }
 0x145   :  { %v514_v0 = vpop.eup %513  ;;  %v227_v21 = vadd.f32 1.0, %v512_v19 }
 0x146   :  { %v228_v24 = vadd.f32 1.0, %v514_v0  ;;  %347 = vmatprep.mubr.f32.mxu1 %v234_v20 }
 0x147   :  { %348 = vmatmul.mubr.f32.gmra.mrb[2].mxu1 %v233_v22  ;;  %v235_v30 = vmul.f32 %v227_v21, %v203_v25 }
 0x148   :  { %v516_v26 = vpop.eup %515  ;;  %v236_v27 = vmul.f32 %v228_v24, %v204_v23 }
 0x149   :  { %v518_v28 = vpop.eup %517  ;;  %v229_v29 = vadd.f32 1.0, %v516_v26 }
 0x14a   :  { %v230_v32 = vadd.f32 1.0, %v518_v28  ;;  %352 = vmatprep.mubr.f32.mxu1 %v236_v27 }
 0x14b   :  { %353 = vmatmul.mubr.f32.gmra.mrb[4].mxu1 %v235_v30  ;;  %v237_v35 = vmul.f32 %v229_v29, %v205_v33 }
 0x14c   :  { %v238_v34 = vmul.f32 %v230_v32, %v206_v31 }
 0x14e   :  { %357 = vmatprep.mubr.f32.mxu1 %v238_v34 }
 0x14f   :  { %358 = vmatmul.mubr.f32.gmra.mrb[6].mxu1 %v237_v35 }
 0x216   :  { %v418_v36 = vpop.f32.mrb[0].mxu1 }
 0x217   :  { %v419_v38 = vpop.f32.mrb[1].mxu1 }
 0x218   :  { %v420_v39 = vadd.f32 %v419_v38, %v418_v36 }
 0x21a   :  { %v345_v40 = vadd.f32 %v420_v39, %v385_v37  ;;  %v421_v41 = vpop.f32.mrb[2].mxu1 }
 0x21b   :  { %v422_v42 = vpop.f32.mrb[3].mxu1 }
 0x21c   :  { %363 = vst [vmem:[#allocation8] sm:$0xff] %v345_v40  ;;  %v423_v43 = vadd.f32 %v422_v42, %v421_v41 }
 0x21e   :  { %v350_v44 = vadd.f32 %v423_v43, %v385_v37  ;;  %v424_v45 = vpop.f32.mrb[4].mxu1 }
 0x21f   :  { %v425_v46 = vpop.f32.mrb[5].mxu1 }
 0x220   :  { %364 = vst [vmem:[#allocation8 + $0x8] sm:$0xff] %v350_v44  ;;  %v426_v47 = vadd.f32 %v425_v46, %v424_v45 }
 0x222   :  { %v355_v48 = vadd.f32 %v426_v47, %v385_v37  ;;  %v427_v49 = vpop.f32.mrb[6].mxu1 }
 0x223   :  { %v428_v50 = vpop.f32.mrb[7].mxu1 }
 0x224   :  { %365 = vst [vmem:[#allocation8 + $0x10] sm:$0xff] %v355_v48  ;;  %v429_v51 = vadd.f32 %v428_v50, %v427_v49 }
 0x226   :  { %v360_v52 = vadd.f32 %v429_v51, %v385_v37 }
 0x228   :  { %366 = vst [vmem:[#allocation8 + $0x18] sm:$0xff] %v360_v52 }
 0x229   :  { %596 = shalt.err (!%p593_p0)
}
 0x22a   :  { %s597_s12 = scalar_lea.hbm %s724_s5, 512 }
 0x22b   :  { %p598_p1 = scmp.ne.s32.totalorder %s724_s5, %s597_s12  ;;  %p601_p2 = scmp.lt.u32.totalorder %s597_s12, %s724_s5 }
 0x22d   :  { %p603_p3 = pnand %p601_p2, %p598_p1 }
 0x22f   :  { %606 = shalt.err (!%p603_p3)
}
 0x230   :  { %378 = dma.vmem_to_hbm [thread:$0]  %s373_s9, 512, %s724_s5, [#allocation4], %s617_s1, %s617_s1, %s618_s17  }
 0x231   :  { %611 = dma.done.wait [#allocation4], 512  }
 0x232   :  { %612 = vsyncadd [#allocation4], 4294966784 }
 0x233   :  { %382 = vsyncpa [#allocation3], 1 }
 0x234   :  { %383 = vsyncpa [#allocation6], 1 }
 0x235   :  { %384 = vsyncpa [#allocation4], 1 }

</bundles_post_ra>
